<compile_context>
chip_gen: v7x
topology: tpu7x:2x2x1
jax: 0.10.0
libtpu: 0.0.40
codegen_flags: <defaults>
</compile_context>

<pallas_src>
import functools

import jax
import jax.numpy as jnp
from jax.experimental import pallas as pl
from jax.experimental.pallas import tpu as pltpu

# "const" values from the reference code (not provided there); chosen small & fixed.
DIMS_ST = 2          # const.dims_st
DIMS_MHD_STATE = 5   # const.dims_mhd_state
DIMS_INPUT = DIMS_ST + DIMS_MHD_STATE + 1  # st + mhd_state + residual(1)

F_PAD = 128          # lane-dense padded output width (kernel stores 128 lanes)


# ---------------------------------------------------------------------------
# Kernel
# ---------------------------------------------------------------------------
def _pid_kernel(n_layers, layer_size, apply_sig,
                z_ref, wuvh_ref, buvh_ref, wz_ref, bz_ref, wf_ref, bf_ref,
                beta_ref, out_ref):
    L = layer_size
    beta = beta_ref[0, 0]                              # scalar from SMEM

    z = z_ref[...]                                     # (TB, DIMS_INPUT)

    # Fused projection [U | V | H0]: one MXU push + one bias add.
    uvh = jnp.dot(z, wuvh_ref[...],
                  preferred_element_type=jnp.float32) + buvh_ref[...]
    u = uvh[:, :L]
    v = uvh[:, L:2 * L]
    h = uvh[:, 2 * L:3 * L]
    d = v - u                                          # hoisted: h = u + g * d

    # Z-layer recurrence.  Ref-indexing bounds the live range of each (L, L)
    # weight tile to a single iteration (avoids pinning 4*n_layers vregs).
    # Note: switch to lax.fori_loop(..., unroll=True) if n_layers grows large.
    for k in range(n_layers):                          # static trip count
        wz_k = wz_ref[k]                               # (L, L)
        bz_k = bz_ref[pl.ds(k, 1), :]                  # (1, L)
        zz = jnp.dot(h, wz_k, preferred_element_type=jnp.float32) + bz_k
        g = jnp.tanh(beta * zz)
        h = u + g * d

    # Output projection into a lane-dense, 128-wide padded slab.
    f = jnp.dot(h, wf_ref[...], preferred_element_type=jnp.float32) + bf_ref[...]
    if apply_sig:
        f = jax.nn.sigmoid(f)
    out_ref[...] = f.astype(out_ref.dtype)


# ---------------------------------------------------------------------------
# Wrapper
# ---------------------------------------------------------------------------
def _resident_spec(arr):
    """Full-array VMEM block with a constant index_map -> stays resident."""
    nd = arr.ndim
    return pl.BlockSpec(arr.shape, lambda i, _n=nd: (0,) * _n)


def pid_transformer_forward(st, U, residual, packed, *, n_layers, layer_size,
                            apply_sig=True, tile_b=256):
    """Pallas wrapper.  st:(B,DIMS_ST)  U:(B,DIMS_MHD_STATE)  residual:(B,1).

    tile_b: batch tile.  128 fills the v5e MXU row dim; 256 matches v6e/v7x.
    """
    z = jnp.concatenate((st, U, residual), axis=1).astype(jnp.float32)  # (B, 8)
    B = z.shape[0]

    if B <= tile_b:
        tb = B                       # single full block (legal: equals full dim)
        num_tiles = 1
        z_p = z
    else:
        tb = tile_b
        num_tiles = pl.cdiv(B, tb)
        pad = num_tiles * tb - B
        z_p = jnp.pad(z, ((0, pad), (0, 0))) if pad else z

    kernel = functools.partial(_pid_kernel, n_layers, layer_size, apply_sig)

    in_specs = [
        pl.BlockSpec((tb, DIMS_INPUT), lambda i: (i, 0)),   # z: batch-tiled
        _resident_spec(packed["W_UVH"]),
        _resident_spec(packed["b_UVH"]),
        _resident_spec(packed["W_Z"]),
        _resident_spec(packed["b_Z"]),
        _resident_spec(packed["W_f"]),
        _resident_spec(packed["b_f"]),
        pl.BlockSpec((1, 1), lambda i: (0, 0),
                     memory_space=pltpu.MemorySpace.SMEM),  # beta scalar
    ]
    out_specs = pl.BlockSpec((tb, F_PAD), lambda i: (i, 0))

    out_full = pl.pallas_call(
        kernel,
        out_shape=jax.ShapeDtypeStruct((num_tiles * tb, F_PAD), jnp.float32),
        grid=(num_tiles,),
        in_specs=in_specs,
        out_specs=out_specs,
        compiler_params=pltpu.CompilerParams(
            dimension_semantics=("parallel",),       # v7x: 2 TCs share batch tiles
            vmem_limit_bytes=32 * 1024 * 1024,       # explicit; safe on v5e/v6e/v7x
        ),
    )(z_p,
      packed["W_UVH"], packed["b_UVH"],
      packed["W_Z"], packed["b_Z"],
      packed["W_f"], packed["b_f"],
      packed["beta"])

    # Drop batch padding and the zero-padded output lanes.
    return out_full[:B, :DIMS_MHD_STATE]


# ---------------------------------------------------------------------------
# Parameters
# ---------------------------------------------------------------------------
def init_params(key, n_layers, layer_size):
    """Deterministic synthetic parameter init (PyTorch-Linear-like scale)."""
    ks = jax.random.split(key, 12)

    def lin(kw, kb, fan_in, fan_out):
        bound = 1.0 / jnp.sqrt(fan_in)
        W = jax.random.uniform(kw, (fan_in, fan_out), jnp.float32, -bound, bound)
        b = jax.random.uniform(kb, (1, fan_out), jnp.float32, -bound, bound)
        return W, b

    W_U, b_U = lin(ks[0], ks[1], DIMS_INPUT, layer_size)
    W_V, b_V = lin(ks[2], ks[3], DIMS_INPUT, layer_size)
    W_H, b_H = lin(ks[4], ks[5], DIMS_INPUT, layer_size)
    bound_z = 1.0 / jnp.sqrt(layer_size)
    W_Z = jax.random.uniform(ks[6], (n_layers, layer_size, layer_size),
                             jnp.float32, -bound_z, bound_z)
    b_Z = jax.random.uniform(ks[7], (n_layers, layer_size),
                             jnp.float32, -bound_z, bound_z)
    W_f, b_f = lin(ks[8], ks[9], layer_size, DIMS_MHD_STATE)
    beta = jax.random.normal(ks[10], (1, 1), jnp.float32)   # nn.Parameter(torch.randn(1))

    return dict(W_U=W_U, b_U=b_U, W_V=W_V, b_V=b_V, W_H0=W_H, b_H0=b_H,
                W_Z=W_Z, b_Z=b_Z, W_f=W_f, b_f=b_f, beta=beta)


def pack_params(params, layer_size):
    """One-time repack: fuse U/V/H0 weights and pad f_theta to 128 output lanes."""
    W_UVH = jnp.concatenate((params["W_U"], params["W_V"], params["W_H0"]), axis=1)
    b_UVH = jnp.concatenate((params["b_U"], params["b_V"], params["b_H0"]), axis=1)
    W_f = jnp.zeros((layer_size, F_PAD), jnp.float32)
    W_f = W_f.at[:, :DIMS_MHD_STATE].set(params["W_f"])
    b_f = jnp.zeros((1, F_PAD), jnp.float32)
    b_f = b_f.at[:, :DIMS_MHD_STATE].set(params["b_f"])
    return dict(W_UVH=W_UVH, b_UVH=b_UVH,
                W_Z=params["W_Z"], b_Z=params["b_Z"],
                W_f=W_f, b_f=b_f,
                beta=params["beta"].reshape(1, 1))


# ---------------------------------------------------------------------------
# Pure-JAX reference (mirrors the PyTorch forward, tanh activation)
# ---------------------------------------------------------------------------
def reference_forward(st, U, residual, params, *, n_layers, apply_sig=True):
    z = jnp.concatenate((st, U, residual), axis=1)
    beta = params["beta"][0, 0]
    u = z @ params["W_U"] + params["b_U"]
    v = z @ params["W_V"] + params["b_V"]
    h = z @ params["W_H0"] + params["b_H0"]
    for k in range(n_layers):
        g = jnp.tanh(beta * (h @ params["W_Z"][k] + params["b_Z"][k][None, :]))
        h = (1.0 - g) * u + g * v
    f = h @ params["W_f"] + params["b_f"]
    if apply_sig:
        f = jax.nn.sigmoid(f)
    return f


# ---------------------------------------------------------------------------
if __name__ == "__main__":
    n_layers = 3
    layer_size = 32

    key = jax.random.PRNGKey(0)
    k_p, k_st, k_u, k_r = jax.random.split(key, 4)
    params = init_params(k_p, n_layers, layer_size)
    packed = pack_params(params, layer_size)

    # --- small batch (single block path) ---
    batch = 8
    st = jax.random.normal(k_st, (batch, DIMS_ST), jnp.float32)
    U = jax.random.normal(k_u, (batch, DIMS_MHD_STATE), jnp.float32)
    residual = jax.random.normal(k_r, (batch, 1), jnp.float32)

    out = pid_transformer_forward(st, U, residual, packed,
                                  n_layers=n_layers, layer_size=layer_size,
                                  apply_sig=True)
    out = jax.block_until_ready(out)
    ref = reference_forward(st, U, residual, params,
                            n_layers=n_layers, apply_sig=True)
    assert out.shape == (batch, DIMS_MHD_STATE)
    assert jnp.max(jnp.abs(out - ref)) < 1e-5, "mismatch vs reference (B=8)"

    # --- larger batch (exercises the tiled grid + batch padding path) ---
    batch2 = 300
    st2 = jax.random.normal(k_st, (batch2, DIMS_ST), jnp.float32)
    U2 = jax.random.normal(k_u, (batch2, DIMS_MHD_STATE), jnp.float32)
    residual2 = jax.random.normal(k_r, (batch2, 1), jnp.float32)

    out2 = pid_transformer_forward(st2, U2, residual2, packed,
                                   n_layers=n_layers, layer_size=layer_size,
                                   apply_sig=True, tile_b=256)
    out2 = jax.block_until_ready(out2)
    ref2 = reference_forward(st2, U2, residual2, params,
                             n_layers=n_layers, apply_sig=True)
    assert out2.shape == (batch2, DIMS_MHD_STATE)
    assert jnp.max(jnp.abs(out2 - ref2)) < 1e-5, "mismatch vs reference (B=300)"

    print("KERNEL_OK")
</pallas_src>

<mosaic_0001>
module attributes {stable_mosaic.version = 11 : i64} {
  func.func @_pid_kernel(%arg0: i32, %arg1: memref<8x8xf32, #tpu.memory_space<vmem>>, %arg2: memref<8x96xf32, #tpu.memory_space<vmem>>, %arg3: memref<1x96xf32, #tpu.memory_space<vmem>>, %arg4: memref<3x32x32xf32, #tpu.memory_space<vmem>>, %arg5: memref<3x32xf32, #tpu.memory_space<vmem>>, %arg6: memref<32x128xf32, #tpu.memory_space<vmem>>, %arg7: memref<1x128xf32, #tpu.memory_space<vmem>>, %arg8: memref<1x1xf32, #tpu.memory_space<smem>>, %arg9: memref<8x128xf32, #tpu.memory_space<vmem>>) attributes {dimension_semantics = [#tpu.dimension_semantics<parallel>], iteration_bounds = array<i64: 1>, scalar_prefetch = 0 : i64, scratch_operands = 0 : i64, tpu.core_type = #tpu.core_type<tc>, window_params = [{transform_indices = @transform_0, window_bounds = array<i64: 8, 8>}, {pipeline_mode = #tpu.pipeline_mode<synchronous>, transform_indices = @transform_1, window_bounds = array<i64: 8, 96>}, {pipeline_mode = #tpu.pipeline_mode<synchronous>, transform_indices = @transform_2, window_bounds = array<i64: 1, 96>}, {pipeline_mode = #tpu.pipeline_mode<synchronous>, transform_indices = @transform_3, window_bounds = array<i64: 3, 32, 32>}, {pipeline_mode = #tpu.pipeline_mode<synchronous>, transform_indices = @transform_4, window_bounds = array<i64: 3, 32>}, {pipeline_mode = #tpu.pipeline_mode<synchronous>, transform_indices = @transform_5, window_bounds = array<i64: 32, 128>}, {pipeline_mode = #tpu.pipeline_mode<synchronous>, transform_indices = @transform_6, window_bounds = array<i64: 1, 128>}, {transform_indices = @transform_7, window_bounds = array<i64: 1, 1>}, {transform_indices = @transform_8, window_bounds = array<i64: 8, 128>}]} {
    %c0 = arith.constant 0 : index
    %c0_0 = arith.constant 0 : index
    %0 = memref.load %arg8[%c0, %c0_0] : memref<1x1xf32, #tpu.memory_space<smem>>
    %c0_1 = arith.constant 0 : index
    %c0_2 = arith.constant 0 : index
    %1 = vector.load %arg1[%c0_1, %c0_2] : memref<8x8xf32, #tpu.memory_space<vmem>>, vector<8x8xf32>
    %c0_3 = arith.constant 0 : index
    %c0_4 = arith.constant 0 : index
    %2 = vector.load %arg2[%c0_3, %c0_4] : memref<8x96xf32, #tpu.memory_space<vmem>>, vector<8x96xf32>
    %cst = arith.constant dense<0.000000e+00> : vector<8x96xf32>
    %3 = tpu.matmul %1, %2, %cst {dimension_numbers = #tpu.dot_dimension_numbers<[1], [0], [0], [1], [0, 0, 1, 1], [], []>} : vector<8x8xf32>, vector<8x96xf32>, vector<8x96xf32> -> vector<8x96xf32>
    %c0_5 = arith.constant 0 : index
    %c0_6 = arith.constant 0 : index
    %4 = vector.load %arg3[%c0_5, %c0_6] : memref<1x96xf32, #tpu.memory_space<vmem>>, vector<1x96xf32>
    %5 = vector.broadcast %4 : vector<1x96xf32> to vector<8x96xf32>
    %6 = arith.addf %3, %5 : vector<8x96xf32>
    %7 = vector.extract_strided_slice %6 {offsets = [0, 0], sizes = [8, 32], strides = [1, 1]} : vector<8x96xf32> to vector<8x32xf32>
    %8 = vector.extract_strided_slice %6 {offsets = [0, 32], sizes = [8, 32], strides = [1, 1]} : vector<8x96xf32> to vector<8x32xf32>
    %9 = vector.extract_strided_slice %6 {offsets = [0, 64], sizes = [8, 32], strides = [1, 1]} : vector<8x96xf32> to vector<8x32xf32>
    %10 = arith.subf %8, %7 : vector<8x32xf32>
    %c0_7 = arith.constant 0 : index
    %c0_8 = arith.constant 0 : index
    %c0_9 = arith.constant 0 : index
    %11 = vector.load %arg4[%c0_7, %c0_8, %c0_9] : memref<3x32x32xf32, #tpu.memory_space<vmem>>, vector<1x32x32xf32>
    %12 = vector.shape_cast %11 : vector<1x32x32xf32> to vector<32x32xf32>
    %c0_10 = arith.constant 0 : index
    %c0_11 = arith.constant 0 : index
    %13 = vector.load %arg5[%c0_10, %c0_11] : memref<3x32xf32, #tpu.memory_space<vmem>>, vector<1x32xf32>
    %cst_12 = arith.constant dense<0.000000e+00> : vector<8x32xf32>
    %14 = tpu.matmul %9, %12, %cst_12 {dimension_numbers = #tpu.dot_dimension_numbers<[1], [0], [0], [1], [0, 0, 1, 1], [], []>} : vector<8x32xf32>, vector<32x32xf32>, vector<8x32xf32> -> vector<8x32xf32>
    %15 = vector.broadcast %13 : vector<1x32xf32> to vector<8x32xf32>
    %16 = arith.addf %14, %15 : vector<8x32xf32>
    %17 = vector.broadcast %0 : f32 to vector<8x32xf32>
    %18 = arith.mulf %17, %16 : vector<8x32xf32>
    %19 = math.tanh %18 : vector<8x32xf32>
    %20 = arith.mulf %19, %10 : vector<8x32xf32>
    %21 = arith.addf %7, %20 : vector<8x32xf32>
    %c1 = arith.constant 1 : index
    %c0_13 = arith.constant 0 : index
    %c0_14 = arith.constant 0 : index
    %22 = vector.load %arg4[%c1, %c0_13, %c0_14] : memref<3x32x32xf32, #tpu.memory_space<vmem>>, vector<1x32x32xf32>
    %23 = vector.shape_cast %22 : vector<1x32x32xf32> to vector<32x32xf32>
    %c1_15 = arith.constant 1 : index
    %c0_16 = arith.constant 0 : index
    %24 = vector.load %arg5[%c1_15, %c0_16] : memref<3x32xf32, #tpu.memory_space<vmem>>, vector<1x32xf32>
    %cst_17 = arith.constant dense<0.000000e+00> : vector<8x32xf32>
    %25 = tpu.matmul %21, %23, %cst_17 {dimension_numbers = #tpu.dot_dimension_numbers<[1], [0], [0], [1], [0, 0, 1, 1], [], []>} : vector<8x32xf32>, vector<32x32xf32>, vector<8x32xf32> -> vector<8x32xf32>
    %26 = vector.broadcast %24 : vector<1x32xf32> to vector<8x32xf32>
    %27 = arith.addf %25, %26 : vector<8x32xf32>
    %28 = vector.broadcast %0 : f32 to vector<8x32xf32>
    %29 = arith.mulf %28, %27 : vector<8x32xf32>
    %30 = math.tanh %29 : vector<8x32xf32>
    %31 = arith.mulf %30, %10 : vector<8x32xf32>
    %32 = arith.addf %7, %31 : vector<8x32xf32>
    %c2 = arith.constant 2 : index
    %c0_18 = arith.constant 0 : index
    %c0_19 = arith.constant 0 : index
    %33 = vector.load %arg4[%c2, %c0_18, %c0_19] : memref<3x32x32xf32, #tpu.memory_space<vmem>>, vector<1x32x32xf32>
    %34 = vector.shape_cast %33 : vector<1x32x32xf32> to vector<32x32xf32>
    %c2_20 = arith.constant 2 : index
    %c0_21 = arith.constant 0 : index
    %35 = vector.load %arg5[%c2_20, %c0_21] : memref<3x32xf32, #tpu.memory_space<vmem>>, vector<1x32xf32>
    %cst_22 = arith.constant dense<0.000000e+00> : vector<8x32xf32>
    %36 = tpu.matmul %32, %34, %cst_22 {dimension_numbers = #tpu.dot_dimension_numbers<[1], [0], [0], [1], [0, 0, 1, 1], [], []>} : vector<8x32xf32>, vector<32x32xf32>, vector<8x32xf32> -> vector<8x32xf32>
    %37 = vector.broadcast %35 : vector<1x32xf32> to vector<8x32xf32>
    %38 = arith.addf %36, %37 : vector<8x32xf32>
    %39 = vector.broadcast %0 : f32 to vector<8x32xf32>
    %40 = arith.mulf %39, %38 : vector<8x32xf32>
    %41 = math.tanh %40 : vector<8x32xf32>
    %42 = arith.mulf %41, %10 : vector<8x32xf32>
    %43 = arith.addf %7, %42 : vector<8x32xf32>
    %c0_23 = arith.constant 0 : index
    %c0_24 = arith.constant 0 : index
    %44 = vector.load %arg6[%c0_23, %c0_24] : memref<32x128xf32, #tpu.memory_space<vmem>>, vector<32x128xf32>
    %cst_25 = arith.constant dense<0.000000e+00> : vector<8x128xf32>
    %45 = tpu.matmul %43, %44, %cst_25 {dimension_numbers = #tpu.dot_dimension_numbers<[1], [0], [0], [1], [0, 0, 1, 1], [], []>} : vector<8x32xf32>, vector<32x128xf32>, vector<8x128xf32> -> vector<8x128xf32>
    %c0_26 = arith.constant 0 : index
    %c0_27 = arith.constant 0 : index
    %46 = vector.load %arg7[%c0_26, %c0_27] : memref<1x128xf32, #tpu.memory_space<vmem>>, vector<1x128xf32>
    %47 = vector.broadcast %46 : vector<1x128xf32> to vector<8x128xf32>
    %48 = arith.addf %45, %47 : vector<8x128xf32>
    %49 = arith.negf %48 : vector<8x128xf32>
    %50 = math.exp %49 : vector<8x128xf32>
    %cst_28 = arith.constant 1.000000e+00 : f32
    %51 = vector.broadcast %cst_28 : f32 to vector<8x128xf32>
    %52 = arith.addf %51, %50 : vector<8x128xf32>
    %53 = arith.divf %51, %52 : vector<8x128xf32>
    %c0_29 = arith.constant 0 : index
    %c0_30 = arith.constant 0 : index
    %54 = vector.load %arg9[%c0_29, %c0_30] : memref<8x128xf32, #tpu.memory_space<vmem>>, vector<8x128xf32>
    tpu.vector_store %arg9[%c0_29, %c0_30], %53 {strides = array<i32>} : memref<8x128xf32, #tpu.memory_space<vmem>>, vector<8x128xf32>,
    return
  }
  func.func @transform_0(%arg0: i32) -> (i32, i32) {
    %c0_i32 = arith.constant 0 : i32
    %c0_i32_0 = arith.constant 0 : i32
    return %arg0, %c0_i32 : i32, i32
  }
  func.func @transform_1(%arg0: i32) -> (i32, i32) {
    %c0_i32 = arith.constant 0 : i32
    %c0_i32_0 = arith.constant 0 : i32
    %c0_i32_1 = arith.constant 0 : i32
    return %c0_i32, %c0_i32_0 : i32, i32
  }
  func.func @transform_2(%arg0: i32) -> (i32, i32) {
    %c0_i32 = arith.constant 0 : i32
    %c0_i32_0 = arith.constant 0 : i32
    %c0_i32_1 = arith.constant 0 : i32
    return %c0_i32, %c0_i32_0 : i32, i32
  }
  func.func @transform_3(%arg0: i32) -> (i32, i32, i32) {
    %c0_i32 = arith.constant 0 : i32
    %c0_i32_0 = arith.constant 0 : i32
    %c0_i32_1 = arith.constant 0 : i32
    %c0_i32_2 = arith.constant 0 : i32
    return %c0_i32, %c0_i32_0, %c0_i32_1 : i32, i32, i32
  }
  func.func @transform_4(%arg0: i32) -> (i32, i32) {
    %c0_i32 = arith.constant 0 : i32
    %c0_i32_0 = arith.constant 0 : i32
    %c0_i32_1 = arith.constant 0 : i32
    return %c0_i32, %c0_i32_0 : i32, i32
  }
  func.func @transform_5(%arg0: i32) -> (i32, i32) {
    %c0_i32 = arith.constant 0 : i32
    %c0_i32_0 = arith.constant 0 : i32
    %c0_i32_1 = arith.constant 0 : i32
    return %c0_i32, %c0_i32_0 : i32, i32
  }
  func.func @transform_6(%arg0: i32) -> (i32, i32) {
    %c0_i32 = arith.constant 0 : i32
    %c0_i32_0 = arith.constant 0 : i32
    %c0_i32_1 = arith.constant 0 : i32
    return %c0_i32, %c0_i32_0 : i32, i32
  }
  func.func @transform_7(%arg0: i32) -> (i32, i32) {
    %c0_i32 = arith.constant 0 : i32
    %c0_i32_0 = arith.constant 0 : i32
    %c0_i32_1 = arith.constant 0 : i32
    return %c0_i32, %c0_i32_0 : i32, i32
  }
  func.func @transform_8(%arg0: i32) -> (i32, i32) {
    %c0_i32 = arith.constant 0 : i32
    %c0_i32_0 = arith.constant 0 : i32
    return %arg0, %c0_i32 : i32, i32
  }
}

</mosaic_0001>

<bundles_post_ra>
// kernel: tpu_custom_call.1
= control target key start
LH: loop header
LB: loop body
LE: loop exit
PB: predicated region body
PF: predicated region fallthrough
CT: control target
= control target key end

     0   :  { %14 = vsyncpa [#allocation4], 0  ;;  %s954_s0 = inlined_call_operand.hbm [shape: f32[8,8], index: 0, kind: input, shape index: {}]   ;;  %s955_s1 = inlined_call_operand.hbm [shape: f32[8,96], index: 1, kind: input, shape index: {}]   ;;  %s956_s2 = inlined_call_operand.vmem [shape: f32[1,96], index: 2, kind: input, shape index: {}]   ;;  %s957_s3 = inlined_call_operand.hbm [shape: f32[3,32,32], index: 3, kind: input, shape index: {}]   ;;  %s958_s4 = inlined_call_operand.vmem [shape: f32[3,32], index: 4, kind: input, shape index: {}]   ;;  %s959_s5 = inlined_call_operand.hbm [shape: f32[32,128], index: 5, kind: input, shape index: {}]   ;;  %s960_s6 = inlined_call_operand.vmem [shape: f32[1,128], index: 6, kind: input, shape index: {}]   ;;  %s961_s7 = inlined_call_operand.<no memory space> [shape: f32[1,1], index: 7, kind: input, shape index: {}]   ;;  %s962_s8 = inlined_call_operand.hbm [shape: f32[8,128], index: 8, kind: output, shape index: {}]  }
   0x1   :  { %15 = vsyncpa [#allocation7], 0 }
   0x2   :  { %16 = vsyncpa [#allocation10], 0 }
   0x3   :  { %17 = vsyncpa [#allocation5], 0  ;;  %s793_s27 = smov [#allocation6]   ;;  %s794_s29 = smov [#allocation3]  }
   0x4   :  { %s34_s28 = sshll.u32 %s793_s27, 4  ;;  %s24_s30 = sshll.u32 %s794_s29, 4  ;;  %s35_s28 = int_to_ptr.vmem [resolvable:$true] %s34_s28  ;;  %s25_s30 = int_to_ptr.vmem [resolvable:$true] %s24_s30 }
   0x5   :  { %s675_s11 = scalar_lea.hbm %s955_s1, 128 }
   0x6   :  { %p676_p0 = scmp.ne.s32.totalorder %s955_s1, %s675_s11  ;;  %p679_p1 = scmp.lt.u32.totalorder %s675_s11, %s955_s1 }
   0x8   :  { %p681_p2 = pnand %p679_p1, %p676_p0 }
   0xa   :  { %684 = shalt.err (!%p681_p2)
}
   0xb   :  { %s685_s16 = scalar_lea.vmem %s35_s28, 128  ;;  %p690_p4 = scmp.lt.s32.totalorder %s35_s28, %s35_s28 }
   0xc   :  { %p686_p3 = scmp.ne.s32.totalorder %s35_s28, %s685_s16  ;;  %p691_p5 = scmp.lt.s32.totalorder %s685_s16, %s685_s16 }
   0xe   :  { %p692_p6 = por %p691_p5, %p690_p4 }
  0x10   :  { %p693_p7 = pnand %p692_p6, %p686_p3 }
  0x12   :  { %696 = shalt.err (!%p693_p7)
}
  0x13   :  { %37 = dma.hbm_to_vmem [thread:$0]  %s955_s1, 128, %s35_s28, [#allocation7]  }
  0x14   :  { %s697_s21 = scalar_lea.hbm %s954_s0, 128 }
  0x15   :  { %p698_p8 = scmp.ne.s32.totalorder %s954_s0, %s697_s21  ;;  %p701_p9 = scmp.lt.u32.totalorder %s697_s21, %s954_s0 }
  0x17   :  { %p703_p10 = pnand %p701_p9, %p698_p8 }
  0x19   :  { %706 = shalt.err (!%p703_p10)
}
  0x1a   :  { %s707_s26 = scalar_lea.vmem %s25_s30, 128  ;;  %p712_p12 = scmp.lt.s32.totalorder %s25_s30, %s25_s30 }
  0x1b   :  { %p708_p11 = scmp.ne.s32.totalorder %s25_s30, %s707_s26  ;;  %p713_p13 = scmp.lt.s32.totalorder %s707_s26, %s707_s26 }
  0x1d   :  { %p714_p0 = por %p713_p13, %p712_p12 }
  0x1f   :  { %p715_p1 = pnand %p714_p0, %p708_p11 }
  0x21   :  { %718 = shalt.err (!%p715_p1)
}
  0x22   :  { %27 = dma.hbm_to_vmem [thread:$0]  %s954_s0, 128, %s25_s30, [#allocation4]  }
  0x23   :  { %s795_s28 = smov [#allocation8]   ;;  %s719_s11 = scalar_lea.hbm %s957_s3, 1536 }
  0x24   :  { %s45_s29 = sshll.u32 %s795_s28, 4  ;;  %p720_p2 = scmp.ne.s32.totalorder %s957_s3, %s719_s11  ;;  %s46_s29 = int_to_ptr.vmem [resolvable:$true] %s45_s29 }
  0x25   :  { %p723_p3 = scmp.lt.u32.totalorder %s719_s11, %s957_s3 }
  0x27   :  { %p725_p4 = pnand %p723_p3, %p720_p2 }
  0x29   :  { %728 = shalt.err (!%p725_p4)
}
  0x2a   :  { %s729_s16 = scalar_lea.vmem %s46_s29, 1536  ;;  %p734_p6 = scmp.lt.s32.totalorder %s46_s29, %s46_s29 }
  0x2b   :  { %p730_p5 = scmp.ne.s32.totalorder %s46_s29, %s729_s16  ;;  %p735_p7 = scmp.lt.s32.totalorder %s729_s16, %s729_s16 }
  0x2d   :  { %p736_p8 = por %p735_p7, %p734_p6 }
  0x2f   :  { %p737_p9 = pnand %p736_p8, %p730_p5 }
  0x31   :  { %740 = shalt.err (!%p737_p9)
}
  0x32   :  { %s796_s0 = smov 128   ;;  %s797_s30 = smov 8  }
  0x33   :  { %51 = dma.hbm_to_vmem [thread:$0]  %s957_s3, 1536, %s46_s29, [#allocation7], %s796_s0, %s796_s0, %s797_s30  }
  0x34   :  { %s798_s19 = smov [#allocation9]   ;;  %s741_s23 = scalar_lea.hbm %s959_s5, 512 }
  0x35   :  { %s59_s20 = sshll.u32 %s798_s19, 4  ;;  %p742_p10 = scmp.ne.s32.totalorder %s959_s5, %s741_s23  ;;  %s60_s20 = int_to_ptr.vmem [resolvable:$true] %s59_s20 }
  0x36   :  { %p745_p11 = scmp.lt.u32.totalorder %s741_s23, %s959_s5 }
  0x38   :  { %p747_p12 = pnand %p745_p11, %p742_p10 }
  0x3a   :  { %750 = shalt.err (!%p747_p12)
}
  0x3b   :  { %s751_s27 = scalar_lea.vmem %s60_s20, 512  ;;  %p756_p0 = scmp.lt.s32.totalorder %s60_s20, %s60_s20 }
  0x3c   :  { %p752_p13 = scmp.ne.s32.totalorder %s60_s20, %s751_s27  ;;  %p757_p1 = scmp.lt.s32.totalorder %s751_s27, %s751_s27 }
  0x3e   :  { %p758_p2 = por %p757_p1, %p756_p0 }
  0x40   :  { %p759_p3 = pnand %p758_p2, %p752_p13 }
  0x42   :  { %762 = shalt.err (!%p759_p3)
}
  0x43   :  { %65 = dma.hbm_to_vmem [thread:$0]  %s959_s5, 512, %s60_s20, [#allocation10], %s796_s0, %s796_s0, %s797_s30  }
  0x44   :  { %785 = dma.done.wait [#allocation4], 128  }
  0x45   :  { %786 = vsyncadd [#allocation4], 4294967168 }
  0x46   :  { %787 = dma.done.wait [#allocation7], 1664  }
  0x47   :  { %788 = vsyncadd [#allocation7], 4294965632 }
  0x48   :  { %789 = dma.done.wait [#allocation10], 512  }
  0x49   :  { %790 = vsyncadd [#allocation10], 4294966784  ;;  %v799_v0 = vmov 0.0   ;;  %vm800_vm0 = vmmov 0   ;;  %vm92_vm1 = vcmask 64512   ;;  %v84_v1 = vld [vmem:[#allocation6] sm:$0xff]  ;;  %v255_v25 = vstv %s961_s7 }
  0x4a   :  { %579 = vmatprep.subr.mxu0 %v799_v0  ;;  %581 = vmatprep.mubr.msk.f32.mxu0 %vm800_vm0, %v799_v0  ;;  %v83_v2 = vld [vmem:[#allocation3] sm:$0xff]  ;;  %v171_v3 = vld [vmem:[#allocation8] sm:$0xff]  ;;  %v172_v4 = vld [vmem:[#allocation8 + $0x8] sm:$0xff]  ;;  %v801_v6 = vmov 0.0|0.0   ;;  %s802_s9 = smov 64   ;;  %s803_s10 = smov 32  }
  0x4b   :  { %592 = vmatprep.mubr.msk.f32.mxu1 %vm800_vm0, %v799_v0  ;;  %580 = vmatpush3.msra.mxu0 %v84_v1  ;;  %v173_v5 = vld [vmem:[#allocation8 + $0x10] sm:$0xff]  ;;  %v629_v7 = vpack.c.bf16 %v172_v4, %v171_v3  ;;  %v174_v8 = vld [vmem:[#allocation8 + $0x18] sm:$0xff]  ;;  %vm182_vm2 = vcmask 261120   ;;  %v265_v17 = vld [vmem:[#allocation8 + $0x20] sm:$0xff] }
  0x4c   :  { %582 = vmatmul.mubr.msk.f32.vlgmr.msra.gmra.mrb[0].mxu0 %vm92_vm1, %v83_v2  ;;  %628 = vmatprep.subr.bf16.mxu1 %v801_v6  ;;  %v632_v9 = vpack.c.bf16 %v174_v8, %v173_v5  ;;  %v546_v10 = vld [vmem:[%s956_s2] ss:$0 sm:$0xff]  ;;  %s804_s2 = smov 96   ;;  %v266_v18 = vld [vmem:[#allocation8 + $0x28] sm:$0xff]  ;;  %v268_v21 = vld [vmem:[#allocation8 + $0x38] sm:$0xff] }
  0x4d   :  { %603 = vmatprep.mubr.msk.f32.mxu0 %vm800_vm0, %v799_v0  ;;  %634 = vmatprep.subr.bf16.mxu0 %v801_v6  ;;  %v267_v19 = vld [vmem:[#allocation8 + $0x30] sm:$0xff]  ;;  %v635_v20 = vpack.c.bf16 %v266_v18, %v265_v17  ;;  %v352_v33 = vld [vmem:[#allocation8 + $0x40] sm:$0xff]  ;;  %v353_v34 = vld [vmem:[#allocation8 + $0x48] sm:$0xff] }
  0x4e   :  { %630 = vmatpush3.bf16.msra.mxu1 %v629_v7  ;;  %v638_v22 = vpack.c.bf16 %v268_v21, %v267_v19  ;;  %v548_v23 = vld [vmem:[%s958_s4] ss:$0 sm:$0xff]  ;;  %v641_v36 = vpack.c.bf16 %v353_v34, %v352_v33  ;;  %v355_v37 = vld [vmem:[#allocation8 + $0x58] sm:$0xff]  ;;  %v550_v39 = vld [vmem:[%s958_s4 + $0x1] ss:$0 sm:$0xff] }
  0x4f   :  { %631 = vmatprep.subr.bf16.mxu1 %v801_v6  ;;  %636 = vmatpush3.bf16.msra.mxu0 %v635_v20  ;;  %v354_v35 = vld [vmem:[#allocation8 + $0x50] sm:$0xff]  ;;  %v438_v47 = vld [vmem:[#allocation9] sm:$0xff]  ;;  %v439_v48 = vld [vmem:[#allocation9 + $0x8] sm:$0xff] }
  0x50   :  { %637 = vmatprep.subr.bf16.mxu0 %v801_v6  ;;  %v644_v38 = vpack.c.bf16 %v355_v37, %v354_v35  ;;  %v440_v49 = vld [vmem:[#allocation9 + $0x10] sm:$0xff]  ;;  %v647_v50 = vpack.c.bf16 %v439_v48, %v438_v47  ;;  %v441_v51 = vld [vmem:[#allocation9 + $0x18] sm:$0xff] }
  0x51   :  { %v650_v52 = vpack.c.bf16 %v441_v51, %v440_v49  ;;  %v552_v53 = vld [vmem:[%s958_s4 + $0x2] ss:$0 sm:$0xff]  ;;  %v554_v61 = vld [vmem:[%s960_s6] ss:$0 sm:$0xff]  ;;  %s805_s4 = smov [#allocation11]  }
  0x52   :  { %633 = vmatpush3.bf16.msra.mxu1 %v632_v9  ;;  %s535_s18 = sshll.u32 %s805_s4, 4  ;;  %s536_s18 = int_to_ptr.vmem [resolvable:$true] %s535_s18 }
  0x53   :  { %640 = vmatprep.subr.bf16.mxu1 %v801_v6  ;;  %639 = vmatpush3.bf16.msra.mxu0 %v638_v22  ;;  %s763_s19 = scalar_lea.vmem %s536_s18, 128  ;;  %p768_p5 = scmp.lt.s32.totalorder %s536_s18, %s536_s18 }
  0x54   :  { %646 = vmatprep.subr.bf16.mxu0 %v801_v6  ;;  %p764_p4 = scmp.ne.s32.totalorder %s536_s18, %s763_s19  ;;  %p769_p6 = scmp.lt.s32.totalorder %s763_s19, %s763_s19 }
  0x56   :  { %p770_p7 = por %p769_p6, %p768_p5 }
  0x58   :  { %p771_p8 = pnand %p770_p7, %p764_p4 }
 0x11f   :  { %v162_v11 = vpop.f32.mrb[0].mxu0 }
 0x120   :  { %v909_v12 = vadd.f32 %v546_v10, %v162_v11  ;;  %v583_v13 = vpop.f32.mrb[1].mxu0 }
 0x122   :  { %180 = vrot.lane.b32.xlu0 %v909_v12, %s802_s9 }
 0x126   :  { %167 = vrot.lane.b32.xlu0 %v909_v12, %s803_s10 }
 0x194   :  { %v181_v14 = vpop.permute.xlu0 %180 }
 0x195   :  { %593 = vmatmul.mubr.msk.f32.vlgmr.msra.gmra.mrb[0].mxu1 %vm182_vm2, %v181_v14 }
 0x196   :  { %614 = vmatprep.mubr.msk.f32.mxu1 %vm800_vm0, %v799_v0  ;;  %642 = vmatpush3.bf16.msra.mxu1 %v641_v36 }
 0x197   :  { %643 = vmatprep.subr.bf16.mxu1 %v801_v6 }
 0x198   :  { %v168_v15 = vpop.permute.xlu0 %167 }
 0x199   :  { %v170_v16 = vsub.f32 %v909_v12, %v168_v15 }
 0x19a   :  { %645 = vmatpush3.bf16.msra.mxu1 %v644_v38 }
 0x19b   :  { %259 = vrot.lane.b32.xlu1 %v170_v16, %s804_s2 }
 0x20d   :  { %v260_v30 = vpop.permute.xlu1 %259 }
 0x268   :  { %v251_v24 = vpop.f32.mrb[0].mxu1 }
 0x269   :  { %v252_v26 = vadd.f32 %v548_v23, %v251_v24  ;;  %v594_v27 = vpop.f32.mrb[1].mxu1 }
 0x26b   :  { %v256_v28 = vmul.f32 %v255_v25, %v252_v26 }
 0x26d   :  { %665 = vtanh.f32 %v256_v28 }
 0x277   :  { %v666_v29 = vpop.eup %665 }
 0x278   :  { %v262_v31 = vmul.f32 %v666_v29, %v260_v30 }
 0x27a   :  { %v263_v32 = vadd.f32 %v262_v31, %v909_v12 }
 0x27c   :  { %604 = vmatmul.mubr.msk.f32.vlgmr.msra.gmra.mrb[2].mxu0 %vm182_vm2, %v263_v32 }
 0x27d   :  { %625 = vmatprep.mubr.msk.f32.mxu0 %vm800_vm0, %v799_v0  ;;  %648 = vmatpush3.bf16.msra.mxu0 %v647_v50 }
 0x27e   :  { %649 = vmatprep.subr.bf16.mxu0 %v801_v6 }
 0x281   :  { %651 = vmatpush3.bf16.msra.mxu0 %v650_v52 }
 0x34f   :  { %v343_v40 = vpop.f32.mrb[2].mxu0 }
 0x350   :  { %v344_v41 = vadd.f32 %v550_v39, %v343_v40  ;;  %v605_v42 = vpop.f32.mrb[3].mxu0 }
 0x352   :  { %v347_v43 = vmul.f32 %v344_v41, %v255_v25 }
 0x354   :  { %667 = vtanh.f32 %v347_v43 }
 0x35e   :  { %v668_v44 = vpop.eup %667 }
 0x35f   :  { %v349_v45 = vmul.f32 %v668_v44, %v260_v30 }
 0x361   :  { %v350_v46 = vadd.f32 %v349_v45, %v909_v12 }
 0x363   :  { %615 = vmatmul.mubr.msk.f32.vlgmr.msra.gmra.mrb[2].mxu1 %vm182_vm2, %v350_v46 }
 0x436   :  { %v430_v54 = vpop.f32.mrb[2].mxu1 }
 0x437   :  { %v431_v55 = vadd.f32 %v552_v53, %v430_v54  ;;  %v616_v56 = vpop.f32.mrb[3].mxu1 }
 0x439   :  { %v434_v57 = vmul.f32 %v431_v55, %v255_v25 }
 0x43b   :  { %669 = vtanh.f32 %v434_v57 }
 0x445   :  { %v670_v58 = vpop.eup %669 }
 0x446   :  { %v436_v59 = vmul.f32 %v670_v58, %v260_v30 }
 0x448   :  { %v437_v60 = vadd.f32 %v436_v59, %v909_v12 }
 0x44a   :  { %626 = vmatmul.mubr.msk.f32.vlgmr.msra.gmra.mrb[4].mxu0 %vm182_vm2, %v437_v60 }
 0x51d   :  { %v518_v62 = vpop.f32.mrb[4].mxu0 }
 0x51e   :  { %v519_v63 = vadd.f32 %v554_v61, %v518_v62  ;;  %v627_v0 = vpop.f32.mrb[5].mxu0 }
 0x520   :  { %v556_v1 = vmul.f32 -1.442695, %v519_v63 }
 0x522   :  { %671 = vpow2.f32 %v556_v1 }
 0x52c   :  { %v672_v2 = vpop.eup %671 }
 0x52d   :  { %v525_v3 = vadd.f32 1.0, %v672_v2 }
 0x52f   :  { %673 = vrcp.f32 %v525_v3 }
 0x539   :  { %v674_v4 = vpop.eup %673 }
 0x53a   :  { %528 = vst [vmem:[#allocation11] sm:$0xff] %v674_v4 }
 0x53b   :  { %774 = shalt.err (!%p771_p8)
}
 0x53c   :  { %s775_s21 = scalar_lea.hbm %s962_s8, 128 }
 0x53d   :  { %p776_p9 = scmp.ne.s32.totalorder %s962_s8, %s775_s21  ;;  %p779_p10 = scmp.lt.u32.totalorder %s775_s21, %s962_s8 }
 0x53f   :  { %p781_p11 = pnand %p779_p10, %p776_p9 }
 0x541   :  { %784 = shalt.err (!%p781_p11)
}
 0x542   :  { %538 = dma.vmem_to_hbm [thread:$0]  %s536_s18, 128, %s962_s8, [#allocation5]  }
 0x543   :  { %791 = dma.done.wait [#allocation5], 128  }
 0x544   :  { %792 = vsyncadd [#allocation5], 4294967168 }
 0x545   :  { %542 = vsyncpa [#allocation4], 1 }
 0x546   :  { %543 = vsyncpa [#allocation7], 1 }
 0x547   :  { %544 = vsyncpa [#allocation10], 1 }
 0x548   :  { %545 = vsyncpa [#allocation5], 1 }

</bundles_post_ra>
